<compile_context>
chip_gen: v6e
topology: v6e:2x2x1
jax: 0.10.0
libtpu: 0.0.40
codegen_flags: <defaults>
</compile_context>

<pallas_src>
import numpy as np
import jax
import jax.numpy as jnp
from jax import lax
from jax.experimental import pallas as pl
from jax.experimental.pallas import tpu as pltpu

# ---- module config: MultiScale_TemporalConv(in=4, out=12, k=3, stride=1,
#                                             dilations=[1,2,3,4], residual=True)
N, C_IN, T, V = 2, 4, 16, 16
C_OUT = 12
DILATIONS = (1, 2, 3, 4)
KSIZE = 3
NUM_BRANCHES = len(DILATIONS) + 2          # 6 branches
BC = C_OUT // NUM_BRANCHES                 # branch channels = 2
EPS = 1e-5

BCT = BC * T                               # 32  (per-branch flattened width)
A_W = 4 * BCT                              # 128 (branches 0..3 slab)
B_OFF = A_W                                # 128 (branch 4 offset)
C_OFF = A_W + BCT                          # 160 (branch 5 offset)
BR_W = NUM_BRANCHES * BCT                  # 192 (all branches)
COUT_T = C_OUT * T                         # 192 (output width)
FUSED_W = BR_W + COUT_T                    # 384 (branches + residual)


# ----------------------------------------------------------------------------
# Pallas kernel: single grid step, whole (N*V, C_in*T) slab resident in VMEM.
# ----------------------------------------------------------------------------
def msconv_kernel(x_ref, w1_ref, h1_ref, opt_ref, s2_ref, h2_ref, o_ref):
    rows = x_ref.shape[0]
    x = x_ref[...]                                          # (rows, C_in*T)

    # ---- stage 1: six branch 1x1 convs + residual 1x1 conv in ONE matmul ----
    y = jnp.dot(x, w1_ref[...], preferred_element_type=jnp.float32)
    y = y + h1_ref[...]                                     # (rows, 384)

    a = jnp.maximum(y[:, :A_W], 0.0)                        # branches 0-3, ReLU
    b = jnp.maximum(y[:, B_OFF:C_OFF], 0.0)                 # branch 4, ReLU
    c = y[:, C_OFF:BR_W]                                    # branch 5 (no ReLU)
    r = y[:, BR_W:]                                         # residual (C_out*T)

    # ---- stage 2a: 4 dilated temporal convs as one block-diag (128,128) matmul
    za = jnp.dot(a, opt_ref[...], preferred_element_type=jnp.float32)

    # ---- stage 2b: branch-4 MaxPool2d((3,1), stride 1, pad (1,0)) -----------
    # Zero-fill shift + boundary mask is exact (b >= 0 post-ReLU); pure VPU work.
    zeros_col = jnp.zeros((rows, 1), jnp.float32)
    tpos = lax.broadcasted_iota(jnp.int32, b.shape, 1) % T  # time index per lane
    left = jnp.concatenate([zeros_col, b[:, :-1]], axis=1)  # y[t-1]
    left = jnp.where(tpos == 0, 0.0, left)
    right = jnp.concatenate([b[:, 1:], zeros_col], axis=1)  # y[t+1]
    right = jnp.where(tpos == T - 1, 0.0, right)
    zb = jnp.maximum(b, jnp.maximum(left, right))

    # ---- assemble branches, fused stage-2 BN, + residual, ReLU, ONE store ---
    z = jnp.concatenate([za, zb, c], axis=1)                # (rows, 192)
    z = z * s2_ref[...] + h2_ref[...]
    o_ref[...] = jnp.maximum(z + r, 0.0).astype(o_ref.dtype)


# ----------------------------------------------------------------------------
# Parameters (deterministic, synthetic), stored in "reference" form.
# ----------------------------------------------------------------------------
def build_params():
    rng = np.random.default_rng(0)

    def nrm(shape, s=0.3):
        return (rng.standard_normal(shape) * s).astype(np.float32)

    def pos(shape):
        return rng.uniform(0.5, 1.5, size=shape).astype(np.float32)

    w1 = np.zeros((NUM_BRANCHES, C_IN, BC), np.float32)     # [b, ci, co]
    s1 = np.zeros((NUM_BRANCHES, BC), np.float32)
    h1 = np.zeros((NUM_BRANCHES, BC), np.float32)
    wt = np.zeros((4, KSIZE, BC, BC), np.float32)           # [b, tap, ci, co]
    s2 = np.zeros((5, BC), np.float32)
    h2 = np.zeros((5, BC), np.float32)

    for b in range(NUM_BRANCHES):
        W = nrm((BC, C_IN))                                 # conv1x1 weight (co, ci)
        bias = nrm((BC,), 0.1)
        gamma, beta = pos((BC,)), nrm((BC,), 0.1)
        mean, var = nrm((BC,), 0.1), pos((BC,))
        scale = gamma / np.sqrt(var + EPS)
        w1[b] = W.T
        s1[b] = scale
        h1[b] = beta + scale * (bias - mean)

    for b in range(4):
        Wt = nrm((BC, BC, KSIZE))                           # temporal weight (co, ci, k)
        bias = nrm((BC,), 0.1)
        gamma, beta = pos((BC,)), nrm((BC,), 0.1)
        mean, var = nrm((BC,), 0.1), pos((BC,))
        scale = gamma / np.sqrt(var + EPS)
        wt[b] = np.transpose(Wt, (2, 1, 0))                 # (k, ci, co)
        s2[b] = scale
        h2[b] = beta + scale * (bias - mean)

    # branch-4 post-maxpool BN (no conv bias)
    gamma, beta = pos((BC,)), nrm((BC,), 0.1)
    mean, var = nrm((BC,), 0.1), pos((BC,))
    scale = gamma / np.sqrt(var + EPS)
    s2[4] = scale
    h2[4] = beta - scale * mean

    # residual: 1x1 conv (C_in -> C_out) + BN
    Wr = nrm((C_OUT, C_IN))
    biasr = nrm((C_OUT,), 0.1)
    gamma, beta = pos((C_OUT,)), nrm((C_OUT,), 0.1)
    mean, var = nrm((C_OUT,), 0.1), pos((C_OUT,))
    scale = gamma / np.sqrt(var + EPS)

    P = dict(w1=w1, s1=s1, h1=h1, wt=wt, s2=s2, h2=h2,
             wr=Wr.T.astype(np.float32),                    # (ci, co)
             sr=scale, hr=(beta + scale * (biasr - mean)))
    return {k: jnp.asarray(v) for k, v in P.items()}


# ----------------------------------------------------------------------------
# Fold the reference params into the fused operators the kernel uses.
# ----------------------------------------------------------------------------
def build_operators(P):
    w1 = np.asarray(P['w1']); s1 = np.asarray(P['s1']); h1 = np.asarray(P['h1'])
    wt = np.asarray(P['wt']); s2 = np.asarray(P['s2']); h2 = np.asarray(P['h2'])
    wr = np.asarray(P['wr']); sr = np.asarray(P['sr']); hr = np.asarray(P['hr'])
    I_T = np.eye(T, dtype=np.float32)

    def shift_mat(s):                                       # shifted[t] = y[t+s], zero-fill
        S = np.zeros((T, T), np.float32)
        for t in range(T):
            u = t + s
            if 0 <= u < T:
                S[u, t] = 1.0
        return S

    # fused stage-1 operator [branch0..5 | residual], BN1/residual-BN scales folded
    w1f = np.zeros((C_IN * T, FUSED_W), np.float32)
    h1f = np.zeros((1, FUSED_W), np.float32)
    for b in range(NUM_BRANCHES):
        base = b * BCT
        for ci in range(C_IN):
            for co in range(BC):
                w1f[ci*T:(ci+1)*T, base + co*T: base + (co+1)*T] = \
                    w1[b, ci, co] * s1[b, co] * I_T
        h1f[0, base:base + BCT] = np.repeat(h1[b], T)
    for ci in range(C_IN):
        for co in range(C_OUT):
            w1f[ci*T:(ci+1)*T, BR_W + co*T: BR_W + (co+1)*T] = \
                wr[ci, co] * sr[co] * I_T
    h1f[0, BR_W:] = np.repeat(hr, T)

    # fused stage-2 operator: block-diagonal dilated temporal convs, BN2 scale folded
    opt = np.zeros((A_W, A_W), np.float32)
    for b, d in enumerate(DILATIONS):
        base = b * BCT
        for j in range(KSIZE):
            S = shift_mat((j - 1) * d)                      # pad = d for k=3, dilation d
            for ci in range(BC):
                for co in range(BC):
                    opt[base + ci*T: base + (ci+1)*T, base + co*T: base + (co+1)*T] += \
                        wt[b, j, ci, co] * s2[b, co] * S

    # fused stage-2 scale/shift over the full 192-wide branch slab
    # (branches 0-3: scale already folded into opt -> 1; branch 5: identity)
    s2f = np.ones((1, BR_W), np.float32)
    h2f = np.zeros((1, BR_W), np.float32)
    for b in range(4):
        h2f[0, b*BCT:(b+1)*BCT] = np.repeat(h2[b], T)
    s2f[0, B_OFF:C_OFF] = np.repeat(s2[4], T)               # post-pool BN (branch 4)
    h2f[0, B_OFF:C_OFF] = np.repeat(h2[4], T)

    ops = dict(w1f=w1f, h1f=h1f, opt=opt, s2f=s2f, h2f=h2f)
    return {k: jnp.asarray(v) for k, v in ops.items()}


# ----------------------------------------------------------------------------
# Wrapper: NCHW <-> kernel layout glue + pallas_call.
# ----------------------------------------------------------------------------
def multiscale_temporal_conv(x_nchw, ops):
    n, cin, t, v = x_nchw.shape
    rows = n * v
    cin_t = cin * t
    # (N, C, T, V) -> (N, V, C, T) -> (N*V, C*T)   (batch folded into the block)
    xk = jnp.transpose(x_nchw, (0, 3, 1, 2)).reshape(rows, cin_t)

    def fullspec(a):
        return pl.BlockSpec(a.shape, lambda i: (0, 0))

    grid_spec = pltpu.PrefetchScalarGridSpec(
        num_scalar_prefetch=0,
        grid=(1,),
        in_specs=[pl.BlockSpec((rows, cin_t), lambda i: (0, 0)),
                  fullspec(ops['w1f']), fullspec(ops['h1f']),
                  fullspec(ops['opt']), fullspec(ops['s2f']), fullspec(ops['h2f'])],
        out_specs=pl.BlockSpec((rows, COUT_T), lambda i: (0, 0)),
    )
    out = pl.pallas_call(
        msconv_kernel,
        out_shape=jax.ShapeDtypeStruct((rows, COUT_T), jnp.float32),
        grid_spec=grid_spec,
        compiler_params=pltpu.CompilerParams(dimension_semantics=("arbitrary",)),
    )(xk, ops['w1f'], ops['h1f'], ops['opt'], ops['s2f'], ops['h2f'])

    # (N*V, C_out*T) -> (N, V, C_out, T) -> (N, C_out, T, V)
    return jnp.transpose(out.reshape(n, v, C_OUT, t), (0, 2, 3, 1))


# ----------------------------------------------------------------------------
# Pure-JAX reference (NCHW), for a correctness check.
# ----------------------------------------------------------------------------
def reference_forward(x, P):
    hi = jax.lax.Precision.HIGHEST
    t = x.shape[2]
    outs = []
    for b in range(NUM_BRANCHES):
        y = jnp.einsum('nctv,cd->ndtv', x, P['w1'][b], precision=hi)
        y = y * P['s1'][b][None, :, None, None] + P['h1'][b][None, :, None, None]
        if b < 5:
            y = jnp.maximum(y, 0.0)
        if b < 4:
            d = DILATIONS[b]
            yp = jnp.pad(y, ((0, 0), (0, 0), (d, d), (0, 0)))
            z = jnp.zeros_like(y)
            for j in range(KSIZE):
                z = z + jnp.einsum('nctv,cd->ndtv',
                                   yp[:, :, j*d:j*d+t, :], P['wt'][b, j], precision=hi)
            z = z * P['s2'][b][None, :, None, None] + P['h2'][b][None, :, None, None]
        elif b == 4:
            yp = jnp.pad(y, ((0, 0), (0, 0), (1, 1), (0, 0)),
                         constant_values=-jnp.inf)
            z = jnp.maximum(jnp.maximum(yp[:, :, 0:t], yp[:, :, 1:t+1]),
                            yp[:, :, 2:t+2])
            z = z * P['s2'][4][None, :, None, None] + P['h2'][4][None, :, None, None]
        else:
            z = y
        outs.append(z)
    out = jnp.concatenate(outs, axis=1)
    res = jnp.einsum('nctv,cd->ndtv', x, P['wr'], precision=hi)
    res = res * P['sr'][None, :, None, None] + P['hr'][None, :, None, None]
    return jnp.maximum(out + res, 0.0)


if __name__ == "__main__":
    P = build_params()
    ops = build_operators(P)

    x = jax.random.normal(jax.random.PRNGKey(0), (N, C_IN, T, V), dtype=jnp.float32)

    run = jax.jit(multiscale_temporal_conv)
    out = jax.block_until_ready(run(x, ops))

    assert out.shape == (N, C_OUT, T, V), out.shape
    ref = reference_forward(x, P)
    np.testing.assert_allclose(np.asarray(out), np.asarray(ref), rtol=1e-2, atol=1e-2)
    print("KERNEL_OK")
</pallas_src>

<mosaic_0001>
module attributes {stable_mosaic.version = 11 : i64} {
  func.func @msconv_kernel(%arg0: i32, %arg1: memref<32x64xf32, #tpu.memory_space<vmem>>, %arg2: memref<64x384xf32, #tpu.memory_space<vmem>>, %arg3: memref<1x384xf32, #tpu.memory_space<vmem>>, %arg4: memref<128x128xf32, #tpu.memory_space<vmem>>, %arg5: memref<1x192xf32, #tpu.memory_space<vmem>>, %arg6: memref<1x192xf32, #tpu.memory_space<vmem>>, %arg7: memref<32x192xf32, #tpu.memory_space<vmem>>) attributes {dimension_semantics = [#tpu.dimension_semantics<arbitrary>], iteration_bounds = array<i64: 1>, scalar_prefetch = 0 : i64, scratch_operands = 0 : i64, tpu.core_type = #tpu.core_type<tc>, window_params = [{pipeline_mode = #tpu.pipeline_mode<synchronous>, transform_indices = @transform_0, window_bounds = array<i64: 32, 64>}, {pipeline_mode = #tpu.pipeline_mode<synchronous>, transform_indices = @transform_1, window_bounds = array<i64: 64, 384>}, {pipeline_mode = #tpu.pipeline_mode<synchronous>, transform_indices = @transform_2, window_bounds = array<i64: 1, 384>}, {pipeline_mode = #tpu.pipeline_mode<synchronous>, transform_indices = @transform_3, window_bounds = array<i64: 128, 128>}, {pipeline_mode = #tpu.pipeline_mode<synchronous>, transform_indices = @transform_4, window_bounds = array<i64: 1, 192>}, {pipeline_mode = #tpu.pipeline_mode<synchronous>, transform_indices = @transform_5, window_bounds = array<i64: 1, 192>}, {pipeline_mode = #tpu.pipeline_mode<synchronous>, transform_indices = @transform_6, window_bounds = array<i64: 32, 192>}]} {
    %c0 = arith.constant 0 : index
    %c0_0 = arith.constant 0 : index
    %0 = vector.load %arg1[%c0, %c0_0] : memref<32x64xf32, #tpu.memory_space<vmem>>, vector<32x64xf32>
    %c0_1 = arith.constant 0 : index
    %c0_2 = arith.constant 0 : index
    %1 = vector.load %arg2[%c0_1, %c0_2] : memref<64x384xf32, #tpu.memory_space<vmem>>, vector<64x384xf32>
    %cst = arith.constant dense<0.000000e+00> : vector<32x384xf32>
    %2 = tpu.matmul %0, %1, %cst {dimension_numbers = #tpu.dot_dimension_numbers<[1], [0], [0], [1], [0, 0, 1, 1], [], []>} : vector<32x64xf32>, vector<64x384xf32>, vector<32x384xf32> -> vector<32x384xf32>
    %c0_3 = arith.constant 0 : index
    %c0_4 = arith.constant 0 : index
    %3 = vector.load %arg3[%c0_3, %c0_4] : memref<1x384xf32, #tpu.memory_space<vmem>>, vector<1x384xf32>
    %4 = vector.broadcast %3 : vector<1x384xf32> to vector<32x384xf32>
    %5 = arith.addf %2, %4 : vector<32x384xf32>
    %6 = vector.extract_strided_slice %5 {offsets = [0, 0], sizes = [32, 128], strides = [1, 1]} : vector<32x384xf32> to vector<32x128xf32>
    %cst_5 = arith.constant 0.000000e+00 : f32
    %7 = vector.broadcast %cst_5 : f32 to vector<32x128xf32>
    %8 = arith.maximumf %6, %7 : vector<32x128xf32>
    %9 = vector.extract_strided_slice %5 {offsets = [0, 128], sizes = [32, 32], strides = [1, 1]} : vector<32x384xf32> to vector<32x32xf32>
    %cst_6 = arith.constant 0.000000e+00 : f32
    %10 = vector.broadcast %cst_6 : f32 to vector<32x32xf32>
    %11 = arith.maximumf %9, %10 : vector<32x32xf32>
    %12 = vector.extract_strided_slice %5 {offsets = [0, 160], sizes = [32, 32], strides = [1, 1]} : vector<32x384xf32> to vector<32x32xf32>
    %13 = vector.extract_strided_slice %5 {offsets = [0, 192], sizes = [32, 192], strides = [1, 1]} : vector<32x384xf32> to vector<32x192xf32>
    %c0_7 = arith.constant 0 : index
    %c0_8 = arith.constant 0 : index
    %14 = vector.load %arg4[%c0_7, %c0_8] : memref<128x128xf32, #tpu.memory_space<vmem>>, vector<128x128xf32>
    %cst_9 = arith.constant dense<0.000000e+00> : vector<32x128xf32>
    %15 = tpu.matmul %8, %14, %cst_9 {dimension_numbers = #tpu.dot_dimension_numbers<[1], [0], [0], [1], [0, 0, 1, 1], [], []>} : vector<32x128xf32>, vector<128x128xf32>, vector<32x128xf32> -> vector<32x128xf32>
    %cst_10 = arith.constant 0.000000e+00 : f32
    %16 = vector.broadcast %cst_10 : f32 to vector<32x1xf32>
    %17 = tpu.iota {dimensions = array<i32: 1>} : vector<32x32xi32>
    %c16_i32 = arith.constant 16 : i32
    %c0_i32 = arith.constant 0 : i32
    %18 = arith.cmpi eq, %c16_i32, %c0_i32 : i32
    %c1_i32 = arith.constant 1 : i32
    %19 = arith.select %18, %c1_i32, %c16_i32 : i32
    %20 = vector.broadcast %19 : i32 to vector<32x32xi32>
    %21 = arith.remsi %17, %20 : vector<32x32xi32>
    %c0_i32_11 = arith.constant 0 : i32
    %22 = vector.broadcast %c0_i32_11 : i32 to vector<32x32xi32>
    %23 = arith.cmpi ne, %21, %22 : vector<32x32xi32>
    %c0_i32_12 = arith.constant 0 : i32
    %24 = vector.broadcast %c0_i32_12 : i32 to vector<32x32xi32>
    %25 = arith.cmpi slt, %21, %24 : vector<32x32xi32>
    %c0_i32_13 = arith.constant 0 : i32
    %26 = arith.cmpi slt, %19, %c0_i32_13 : i32
    %27 = vector.broadcast %26 : i1 to vector<32x32xi1>
    %28 = vector.broadcast %27 : vector<32x32xi1> to vector<32x32xi1>
    %29 = arith.xori %25, %28 : vector<32x32xi1>
    %30 = arith.andi %29, %23 : vector<32x32xi1>
    %31 = vector.broadcast %19 : i32 to vector<32x32xi32>
    %32 = arith.addi %21, %31 : vector<32x32xi32>
    %33 = arith.select %30, %32, %21 : vector<32x32xi1>, vector<32x32xi32>
    %34 = vector.extract_strided_slice %11 {offsets = [0, 0], sizes = [32, 31], strides = [1, 1]} : vector<32x32xf32> to vector<32x31xf32>
    %35 = tpu.concatenate %16, %34 in 1 : vector<32x1xf32>, vector<32x31xf32> -> vector<32x32xf32>
    %c0_i32_14 = arith.constant 0 : i32
    %36 = vector.broadcast %c0_i32_14 : i32 to vector<32x32xi32>
    %37 = arith.cmpi eq, %33, %36 : vector<32x32xi32>
    %cst_15 = arith.constant 0.000000e+00 : f32
    %38 = vector.broadcast %cst_15 : f32 to vector<32x32xf32>
    %39 = arith.select %37, %38, %35 : vector<32x32xi1>, vector<32x32xf32>
    %40 = vector.extract_strided_slice %11 {offsets = [0, 1], sizes = [32, 31], strides = [1, 1]} : vector<32x32xf32> to vector<32x31xf32>
    %41 = tpu.concatenate %40, %16 in 1 : vector<32x31xf32>, vector<32x1xf32> -> vector<32x32xf32>
    %c15_i32 = arith.constant 15 : i32
    %42 = vector.broadcast %c15_i32 : i32 to vector<32x32xi32>
    %43 = arith.cmpi eq, %33, %42 : vector<32x32xi32>
    %cst_16 = arith.constant 0.000000e+00 : f32
    %44 = vector.broadcast %cst_16 : f32 to vector<32x32xf32>
    %45 = arith.select %43, %44, %41 : vector<32x32xi1>, vector<32x32xf32>
    %46 = arith.maximumf %39, %45 : vector<32x32xf32>
    %47 = arith.maximumf %11, %46 : vector<32x32xf32>
    %48 = tpu.concatenate %15, %47, %12 in 1 : vector<32x128xf32>, vector<32x32xf32>, vector<32x32xf32> -> vector<32x192xf32>
    %c0_17 = arith.constant 0 : index
    %c0_18 = arith.constant 0 : index
    %49 = vector.load %arg5[%c0_17, %c0_18] : memref<1x192xf32, #tpu.memory_space<vmem>>, vector<1x192xf32>
    %50 = vector.broadcast %49 : vector<1x192xf32> to vector<32x192xf32>
    %51 = arith.mulf %48, %50 : vector<32x192xf32>
    %c0_19 = arith.constant 0 : index
    %c0_20 = arith.constant 0 : index
    %52 = vector.load %arg6[%c0_19, %c0_20] : memref<1x192xf32, #tpu.memory_space<vmem>>, vector<1x192xf32>
    %53 = vector.broadcast %52 : vector<1x192xf32> to vector<32x192xf32>
    %54 = arith.addf %51, %53 : vector<32x192xf32>
    %55 = arith.addf %54, %13 : vector<32x192xf32>
    %cst_21 = arith.constant 0.000000e+00 : f32
    %56 = vector.broadcast %cst_21 : f32 to vector<32x192xf32>
    %57 = arith.maximumf %55, %56 : vector<32x192xf32>
    %c0_22 = arith.constant 0 : index
    %c0_23 = arith.constant 0 : index
    %58 = vector.load %arg7[%c0_22, %c0_23] : memref<32x192xf32, #tpu.memory_space<vmem>>, vector<32x192xf32>
    tpu.vector_store %arg7[%c0_22, %c0_23], %57 {strides = array<i32>} : memref<32x192xf32, #tpu.memory_space<vmem>>, vector<32x192xf32>,
    return
  }
  func.func @transform_0(%arg0: i32) -> (i32, i32) {
    %c0_i32 = arith.constant 0 : i32
    %c0_i32_0 = arith.constant 0 : i32
    %c0_i32_1 = arith.constant 0 : i32
    return %c0_i32, %c0_i32_0 : i32, i32
  }
  func.func @transform_1(%arg0: i32) -> (i32, i32) {
    %c0_i32 = arith.constant 0 : i32
    %c0_i32_0 = arith.constant 0 : i32
    %c0_i32_1 = arith.constant 0 : i32
    return %c0_i32, %c0_i32_0 : i32, i32
  }
  func.func @transform_2(%arg0: i32) -> (i32, i32) {
    %c0_i32 = arith.constant 0 : i32
    %c0_i32_0 = arith.constant 0 : i32
    %c0_i32_1 = arith.constant 0 : i32
    return %c0_i32, %c0_i32_0 : i32, i32
  }
  func.func @transform_3(%arg0: i32) -> (i32, i32) {
    %c0_i32 = arith.constant 0 : i32
    %c0_i32_0 = arith.constant 0 : i32
    %c0_i32_1 = arith.constant 0 : i32
    return %c0_i32, %c0_i32_0 : i32, i32
  }
  func.func @transform_4(%arg0: i32) -> (i32, i32) {
    %c0_i32 = arith.constant 0 : i32
    %c0_i32_0 = arith.constant 0 : i32
    %c0_i32_1 = arith.constant 0 : i32
    return %c0_i32, %c0_i32_0 : i32, i32
  }
  func.func @transform_5(%arg0: i32) -> (i32, i32) {
    %c0_i32 = arith.constant 0 : i32
    %c0_i32_0 = arith.constant 0 : i32
    %c0_i32_1 = arith.constant 0 : i32
    return %c0_i32, %c0_i32_0 : i32, i32
  }
  func.func @transform_6(%arg0: i32) -> (i32, i32) {
    %c0_i32 = arith.constant 0 : i32
    %c0_i32_0 = arith.constant 0 : i32
    %c0_i32_1 = arith.constant 0 : i32
    return %c0_i32, %c0_i32_0 : i32, i32
  }
}

</mosaic_0001>

<bundles_post_ra>
// kernel: multiscale_temporal_conv.1
= control target key start
LH: loop header
LB: loop body
LE: loop exit
PB: predicated region body
PF: predicated region fallthrough
CT: control target
= control target key end

     0   :  { %v647_v3 = vmov 0.0   ;;  %vm68_vm0 = vcmask 523264   ;;  %v53_v45 = vlaneseq  ;;  %s650_s13 = smov 127   ;;  %vm394_vm1 = vcmask 7168   ;;  %s970_s1 = inlined_call_operand.vmem [shape: f32[64,384], index: 1, kind: input, shape index: {}]   ;;  %s971_s3 = inlined_call_operand.vmem [shape: f32[128,128], index: 3, kind: input, shape index: {}]   ;;  %s972_s0 = inlined_call_operand.vmem [shape: f32[32,64], index: 0, kind: input, shape index: {}]   ;;  %s973_s2 = inlined_call_operand.vmem [shape: f32[1,384], index: 2, kind: input, shape index: {}]   ;;  %s974_s4 = inlined_call_operand.vmem [shape: f32[1,192], index: 4, kind: input, shape index: {}]   ;;  %s975_s5 = inlined_call_operand.vmem [shape: f32[1,192], index: 5, kind: input, shape index: {}]   ;;  %s976_s6 = inlined_call_operand.vmem [shape: f32[32,192], index: 6, kind: output, shape index: {}]  }
   0x1   :  { %v49_v0 = vld [vmem:[%s970_s1 + $0xb0] sm:$0xff]  ;;  %v48_v1 = vld [vmem:[%s970_s1 + $0xa8] sm:$0xff]  ;;  %v46_v2 = vld [vmem:[%s970_s1 + $0x98] sm:$0xff]  ;;  %145 = vmatprep.mubr.f32.mxu1 %v647_v3  ;;  %vm416_vm3 = vcmask 252928   ;;  %vm434_vm5 = vcmask 261120  }
   0x2   :  { %97 = vmatprep.subr.mxu1 %v49_v0  ;;  %v45_v4 = vld [vmem:[%s970_s1 + $0x90] sm:$0xff]  ;;  %v43_v5 = vld [vmem:[%s970_s1 + $0x80] sm:$0xff]  ;;  %v42_v6 = vld [vmem:[%s970_s1 + $0x78] sm:$0xff]  ;;  %v54_v46 = vshrl.u32 %v53_v45, 7 }
   0x3   :  { %98 = vmatpush1.msra.mxu1 %v48_v1  ;;  %v40_v7 = vld [vmem:[%s970_s1 + $0x68] sm:$0xff]  ;;  %v39_v8 = vld [vmem:[%s970_s1 + $0x60] sm:$0xff]  ;;  %v37_v9 = vld [vmem:[%s970_s1 + $0x50] sm:$0xff] }
   0x4   :  { %99 = vmatprep.subr.mxu1 %v46_v2  ;;  %v36_v10 = vld [vmem:[%s970_s1 + $0x48] sm:$0xff]  ;;  %v34_v11 = vld [vmem:[%s970_s1 + $0x38] sm:$0xff]  ;;  %v33_v12 = vld [vmem:[%s970_s1 + $0x30] sm:$0xff]  ;;  %v831_v47 = vsub.s32 0, %v54_v46  ;;  %v836_v49 = vsub.s32 1, %v54_v46 }
   0x5   :  { %100 = vmatpush1.msra.mxu1 %v45_v4  ;;  %v278_v13 = vld [vmem:[%s971_s3 + $0x78] sm:$0xff]  ;;  %v277_v14 = vld [vmem:[%s971_s3 + $0x70] sm:$0xff]  ;;  %v31_v15 = vld [vmem:[%s970_s1 + $0x20] sm:$0xff] }
   0x6   :  { %101 = vmatprep.subr.mxu1 %v43_v5  ;;  %605 = vmatprep.subr.mxu0 %v278_v13  ;;  %v30_v16 = vld [vmem:[%s970_s1 + $0x18] sm:$0xff]  ;;  %v276_v17 = vld [vmem:[%s971_s3 + $0x68] sm:$0xff]  ;;  %v27_v19 = vld [vmem:[%s970_s1] sm:$0xff] }
   0x7   :  { %102 = vmatpush1.msra.mxu1 %v42_v6  ;;  %606 = vmatpush3.msra.mxu0 %v278_v13  ;;  %v28_v18 = vld [vmem:[%s970_s1 + $0x8] sm:$0xff]  ;;  %v275_v20 = vld [vmem:[%s971_s3 + $0x60] sm:$0xff]  ;;  %v50_v22 = vld [vmem:[%s970_s1 + $0xb8] sm:$0xff] }
   0x8   :  { %103 = vmatprep.subr.mxu1 %v40_v7  ;;  %607 = vmatprep.subr.mxu0 %v277_v14  ;;  %v23_v21 = vld [vmem:[%s972_s0] sm:$0xff]  ;;  %v274_v24 = vld [vmem:[%s971_s3 + $0x58] sm:$0xff]  ;;  %v24_v25 = vld [vmem:[%s972_s0 + $0x8] sm:$0xff] }
   0x9   :  { %104 = vmatpush1.msra.mxu1 %v39_v8  ;;  %608 = vmatpush3.msra.mxu0 %v277_v14  ;;  %v47_v23 = vld [vmem:[%s970_s1 + $0xa0] sm:$0xff]  ;;  %v44_v26 = vld [vmem:[%s970_s1 + $0x88] sm:$0xff]  ;;  %v41_v27 = vld [vmem:[%s970_s1 + $0x70] sm:$0xff] }
   0xa   :  { %105 = vmatprep.subr.mxu1 %v37_v9  ;;  %609 = vmatprep.subr.mxu0 %v276_v17  ;;  %v273_v28 = vld [vmem:[%s971_s3 + $0x50] sm:$0xff]  ;;  %v38_v30 = vld [vmem:[%s970_s1 + $0x58] sm:$0xff]  ;;  %v35_v31 = vld [vmem:[%s970_s1 + $0x40] sm:$0xff] }
   0xb   :  { %106 = vmatpush1.msra.mxu1 %v36_v10  ;;  %610 = vmatpush3.msra.mxu0 %v276_v17  ;;  %v25_v29 = vld [vmem:[%s972_s0 + $0x10] sm:$0xff]  ;;  %v272_v32 = vld [vmem:[%s971_s3 + $0x48] sm:$0xff]  ;;  %v26_v33 = vld [vmem:[%s972_s0 + $0x18] sm:$0xff] }
   0xc   :  { %107 = vmatprep.subr.mxu1 %v34_v11  ;;  %611 = vmatprep.subr.mxu0 %v275_v20  ;;  %v32_v34 = vld [vmem:[%s970_s1 + $0x28] sm:$0xff]  ;;  %v29_v35 = vld [vmem:[%s970_s1 + $0x10] sm:$0xff]  ;;  %v271_v36 = vld [vmem:[%s971_s3 + $0x40] sm:$0xff]  ;;  %v63_v11 = vsub.s32 2, %v54_v46 }
   0xd   :  { %108 = vmatpush1.msra.mxu1 %v33_v12  ;;  %612 = vmatpush3.msra.mxu0 %v275_v20  ;;  %v270_v37 = vld [vmem:[%s971_s3 + $0x38] sm:$0xff]  ;;  %v269_v38 = vld [vmem:[%s971_s3 + $0x30] sm:$0xff]  ;;  %v268_v39 = vld [vmem:[%s971_s3 + $0x28] sm:$0xff] }
   0xe   :  { %109 = vmatprep.subr.mxu1 %v31_v15  ;;  %613 = vmatprep.subr.mxu0 %v274_v24  ;;  %v267_v40 = vld [vmem:[%s971_s3 + $0x20] sm:$0xff]  ;;  %v266_v41 = vld [vmem:[%s971_s3 + $0x18] sm:$0xff]  ;;  %v265_v42 = vld [vmem:[%s971_s3 + $0x10] sm:$0xff] }
   0xf   :  { %110 = vmatpush1.msra.mxu1 %v30_v16  ;;  %614 = vmatpush3.msra.mxu0 %v274_v24  ;;  %v264_v43 = vld [vmem:[%s971_s3 + $0x8] sm:$0xff]  ;;  %v263_v44 = vld [vmem:[%s971_s3] sm:$0xff]  ;;  %s648_s3 = smov 64  }
  0x10   :  { %111 = vmatprep.subr.mxu1 %v28_v18  ;;  %615 = vmatprep.subr.mxu0 %v273_v28  ;;  %v51_v48 = vld [vmem:[%s973_s2] sm:$0x7]  ;;  %s649_s2 = smov 1  }
  0x11   :  { %112 = vmatpush1.msra.mxu1 %v27_v19  ;;  %616 = vmatpush3.msra.mxu0 %v273_v28  ;;  %v56_v50 = vrot.slane %v51_v48, %v831_v47  ;;  %v60_v51 = vrot.slane %v51_v48, %v836_v49  ;;  %v64_v14 = vrot.slane %v51_v48, %v63_v11 }
  0x12   :  { %543 = vmatmul.mubr.msk.f32.vlgmr.msra.gmra.mxu1 %vm68_vm0, %v23_v21  ;;  %583 = vmatprep.subr.mxu1 %v50_v22 }
  0x13   :  { %151 = vmatprep.mubr.f32.mxu1 %v647_v3  ;;  %584 = vmatpush3.msra.mxu1 %v50_v22  ;;  %v365_v22 = vand.u32 127, %v53_v45 }
  0x14   :  { %585 = vmatprep.subr.mxu1 %v47_v23  ;;  %617 = vmatprep.subr.mxu0 %v272_v32 }
  0x15   :  { %586 = vmatpush3.msra.mxu1 %v47_v23  ;;  %618 = vmatpush3.msra.mxu0 %v272_v32  ;;  %v370_v24 = vand.u32 15, %v365_v22 }
  0x16   :  { %544 = vmatmul.mubr.msk.f32.gmra.mxu1 %vm68_vm0, %v24_v25  ;;  %587 = vmatprep.subr.mxu1 %v44_v26 }
  0x17   :  { %157 = vmatprep.mubr.f32.mxu1 %v647_v3  ;;  %588 = vmatpush3.msra.mxu1 %v44_v26  ;;  %vm883_vm2 = vcmp.eq.s32.totalorder %v370_v24, 0  ;;  %vm888_vm4 = vcmp.eq.s32.totalorder %v370_v24, 15 }
  0x18   :  { %589 = vmatprep.subr.mxu1 %v41_v27  ;;  %619 = vmatprep.subr.mxu0 %v271_v36 }
  0x19   :  { %590 = vmatpush3.msra.mxu1 %v41_v27  ;;  %620 = vmatpush3.msra.mxu0 %v271_v36 }
  0x1a   :  { %545 = vmatmul.mubr.msk.f32.gmra.mxu1 %vm68_vm0, %v25_v29  ;;  %591 = vmatprep.subr.mxu1 %v38_v30 }
  0x1b   :  { %163 = vmatprep.mubr.f32.mxu1 %v647_v3  ;;  %592 = vmatpush3.msra.mxu1 %v38_v30 }
  0x1c   :  { %593 = vmatprep.subr.mxu1 %v35_v31  ;;  %621 = vmatprep.subr.mxu0 %v270_v37 }
  0x1d   :  { %594 = vmatpush3.msra.mxu1 %v35_v31  ;;  %622 = vmatpush3.msra.mxu0 %v270_v37 }
  0x1e   :  { %546 = vmatmul.mubr.msk.f32.gmra.mxu1 %vm68_vm0, %v26_v33  ;;  %595 = vmatprep.subr.mxu1 %v32_v34 }
  0x1f   :  { %596 = vmatpush3.msra.mxu1 %v32_v34  ;;  %599 = vmatprep.mubr.msk.f32.mxu1 %vm68_vm0, %v23_v21 }
  0x20   :  { %597 = vmatprep.subr.mxu1 %v29_v35  ;;  %623 = vmatprep.subr.mxu0 %v269_v38 }
  0x21   :  { %598 = vmatpush3.msra.mxu1 %v29_v35  ;;  %624 = vmatpush3.msra.mxu0 %v269_v38 }
  0x22   :  { %600 = vmatmul.mubr.msk.f32.vlgmr.msra.gmra.mxu1 %vm68_vm0, %v24_v25  ;;  %625 = vmatprep.subr.mxu0 %v268_v39 }
  0x23   :  { %602 = vmatprep.mubr.msk.f32.mxu1 %vm68_vm0, %v25_v29  ;;  %626 = vmatpush3.msra.mxu0 %v268_v39 }
  0x24   :  { %627 = vmatprep.subr.mxu0 %v267_v40 }
  0x25   :  { %628 = vmatpush3.msra.mxu0 %v267_v40 }
  0x26   :  { %603 = vmatmul.mubr.msk.f32.gmra.mxu1 %vm68_vm0, %v26_v33  ;;  %629 = vmatprep.subr.mxu0 %v266_v41 }
  0x27   :  { %630 = vmatpush3.msra.mxu0 %v266_v41 }
  0x28   :  { %631 = vmatprep.subr.mxu0 %v265_v42 }
  0x29   :  { %632 = vmatpush3.msra.mxu0 %v265_v42 }
  0x2a   :  { %633 = vmatprep.subr.mxu0 %v264_v43 }
  0x2b   :  { %634 = vmatpush3.msra.mxu0 %v264_v43  ;;  %v439_v43 = vld [vmem:[%s974_s4] sm:$0x3] }
  0x2c   :  { %635 = vmatprep.subr.mxu0 %v263_v44 }
  0x2d   :  { %636 = vmatpush3.msra.mxu0 %v263_v44 }
  0xd2   :  { %v147_v52 = vpop.f32.mrf.mxu1 }
  0xd3   :  { %v148_v53 = vadd.f32 %v147_v52, %v56_v50  ;;  %v448_v52 = vrot.slane %v439_v43, %v836_v49 }
  0xd4   :  { %v149_v54 = vpop.f32.mrf.mxu1 }
  0xd5   :  { %v840_v55 = vadd.f32 %v149_v54, %v60_v51  ;;  %v255_v56 = vmax.f32 %v148_v53, 0.0  ;;  %v459_v53 = vld [vmem:[%s975_s5] sm:$0x3] }
  0xd6   :  { %v153_v57 = vpop.f32.mrf.mxu1  ;;  %v464_v27 = vrot.slane %v459_v53, %v831_v47 }
  0xd7   :  { %v154_v58 = vadd.f32 %v153_v57, %v56_v50  ;;  %487 = vrot.lane.b32.xlu0 %v840_v55, %s648_s3  ;;  %637 = vmatprep.mubr.f32.mxu0 %v255_v56  ;;  %v847_v62 = vmax.f32 %v840_v55, 0.0 }
  0xd8   :  { %v155_v59 = vpop.f32.mrf.mxu1 }
  0xd9   :  { %v256_v60 = vmax.f32 %v154_v58, 0.0  ;;  %v844_v61 = vadd.f32 %v155_v59, %v60_v51 }
  0xda   :  { %v159_v63 = vpop.f32.mrf.mxu1 }
  0xdb   :  { %v160_v0 = vadd.f32 %v159_v63, %v56_v50  ;;  %382 = vrot.lane.b32.xlu0 %v847_v62, %s649_s2  ;;  %638 = vmatmul.mubr.f32.vlgmr.msra.gmra.mxu0 %v256_v60  ;;  %v851_v1 = vmax.f32 %v844_v61, 0.0 }
  0xdc   :  { %v161_v2 = vpop.f32.mrf.mxu1 }
  0xdd   :  { %v257_v3 = vmax.f32 %v160_v0, 0.0  ;;  %v853_v4 = vadd.f32 %v161_v2, %v60_v51  ;;  %406 = vrot.lane.b32.xlu1 %v851_v1, %s650_s13 }
  0xde   :  { %v165_v5 = vpop.f32.mrf.mxu1 }
  0xdf   :  { %v166_v6 = vadd.f32 %v165_v5, %v56_v50  ;;  %404 = vrot.lane.b32.xlu0 %v847_v62, %s650_s13  ;;  %640 = vmatprep.mubr.f32.mxu0 %v257_v3  ;;  %v858_v7 = vmax.f32 %v853_v4, 0.0 }
  0xe0   :  { %v167_v8 = vpop.f32.mrf.mxu1 }
  0xe1   :  { %v258_v9 = vmax.f32 %v166_v6, 0.0  ;;  %v860_v10 = vadd.f32 %v167_v8, %v60_v51  ;;  %386 = vrot.lane.b32.xlu1 %v858_v7, %s649_s2 }
  0xe2   :  { %v601_v13 = vpop.f32.mrf.mxu1 }
  0xe3   :  { %384 = vrot.lane.b32.xlu0 %v851_v1, %s649_s2  ;;  %641 = vmatmul.mubr.f32.gmra.mxu0 %v258_v9  ;;  %v865_v12 = vmax.f32 %v860_v10, 0.0  ;;  %v242_v16 = vadd.f32 %v601_v13, %v64_v14 }
  0xe4   :  { %v236_v15 = vpop.f32.mrf.mxu1 }
  0xe5   :  { %388 = vrot.lane.b32.xlu1 %v865_v12, %s649_s2  ;;  %v237_v18 = vadd.f32 %v236_v15, %v64_v14 }
  0xe6   :  { %v604_v17 = vpop.f32.mrf.mxu1 }
  0xe7   :  { %408 = vrot.lane.b32.xlu0 %v858_v7, %s650_s13  ;;  %v252_v21 = vadd.f32 %v604_v17, %v64_v14 }
  0xe8   :  { %v246_v19 = vpop.f32.mrf.mxu1 }
  0xe9   :  { %410 = vrot.lane.b32.xlu1 %v865_v12, %s650_s13  ;;  %v247_v20 = vadd.f32 %v246_v19, %v64_v14 }
  0xeb   :  { %491 = vrot.lane.b32.xlu0 %v844_v61, %s648_s3 }
  0xed   :  { %493 = vrot.lane.b32.xlu1 %v242_v16, %s648_s3 }
  0xef   :  { %495 = vrot.lane.b32.xlu0 %v853_v4, %s648_s3 }
  0xf1   :  { %489 = vrot.lane.b32.xlu1 %v237_v18, %s648_s3 }
  0xf3   :  { %499 = vrot.lane.b32.xlu0 %v860_v10, %s648_s3 }
  0xf5   :  { %497 = vrot.lane.b32.xlu1 %v247_v20, %s648_s3 }
  0xf9   :  { %501 = vrot.lane.b32.xlu1 %v252_v21, %s648_s3 }
 0x149   :  { %v881_v23 = vpop.permute.xlu0 %487 }
 0x14d   :  { %v383_v25 = vpop.permute.xlu0 %382 }
 0x14e   :  { %v395_v28 = vsel %vm394_vm1, 0.0, %v383_v25  ;;  %v444_v25 = vrot.slane %v439_v43, %v831_v47 }
 0x14f   :  { %v407_v26 = vpop.permute.xlu1 %406  ;;  %v400_v32 = vsel %vm883_vm2, 0.0, %v395_v28 }
 0x150   :  { %v418_v35 = vsel %vm416_vm3, %v407_v26, 0.0 }
 0x151   :  { %v405_v29 = vpop.permute.xlu0 %404  ;;  %v423_v39 = vsel %vm888_vm4, 0.0, %v418_v35 }
 0x152   :  { %v417_v31 = vsel %vm416_vm3, %v405_v29, 0.0 }
 0x153   :  { %v422_v33 = vsel %vm888_vm4, 0.0, %v417_v31  ;;  %v387_v34 = vpop.permute.xlu1 %386 }
 0x154   :  { %v426_v36 = vmax.f32 %v400_v32, %v422_v33  ;;  %v397_v44 = vsel %vm394_vm1, 0.0, %v387_v34 }
 0x155   :  { %v385_v37 = vpop.permute.xlu0 %384  ;;  %v402_v54 = vsel %vm883_vm2, 0.0, %v397_v44 }
 0x156   :  { %v396_v38 = vsel %vm394_vm1, 0.0, %v385_v37  ;;  %v430_v40 = vmax.f32 %v847_v62, %v426_v36 }
 0x157   :  { %v401_v41 = vsel %vm883_vm2, 0.0, %v396_v38  ;;  %v389_v42 = vpop.permute.xlu1 %388 }
 0x158   :  { %v427_v45 = vmax.f32 %v401_v41, %v423_v39  ;;  %v398_v50 = vsel %vm394_vm1, 0.0, %v389_v42  ;;  %v435_v58 = vsel %vm434_vm5, %v430_v40, %v840_v55 }
 0x159   :  { %v409_v46 = vpop.permute.xlu0 %408  ;;  %v403_v63 = vsel %vm883_vm2, 0.0, %v398_v50  ;;  %v452_v6 = vmul.f32 %v448_v52, %v435_v58 }
 0x15a   :  { %v431_v48 = vmax.f32 %v851_v1, %v427_v45  ;;  %v419_v51 = vsel %vm416_vm3, %v409_v46, 0.0  ;;  %v468_v1 = vrot.slane %v459_v53, %v836_v49 }
 0x15b   :  { %v424_v56 = vsel %vm888_vm4, 0.0, %v419_v51  ;;  %v411_v57 = vpop.permute.xlu1 %410 }
 0x15c   :  { %v428_v59 = vmax.f32 %v402_v54, %v424_v56  ;;  %v420_v60 = vsel %vm416_vm3, %v411_v57, 0.0  ;;  %v436_v62 = vsel %vm434_vm5, %v431_v48, %v844_v61  ;;  %v472_v13 = vadd.f32 %v468_v1, %v452_v6 }
 0x15d   :  { %v425_v0 = vsel %vm888_vm4, 0.0, %v420_v60  ;;  %v454_v2 = vmul.f32 %v448_v52, %v436_v62  ;;  %v492_v26 = vpop.permute.xlu0 %491 }
 0x15e   :  { %v432_v3 = vmax.f32 %v858_v7, %v428_v59  ;;  %v429_v5 = vmax.f32 %v403_v63, %v425_v0 }
 0x15f   :  { %v494_v55 = vpop.permute.xlu1 %493  ;;  %v474_v8 = vadd.f32 %v468_v1, %v454_v2 }
 0x160   :  { %v433_v9 = vmax.f32 %v865_v12, %v429_v5  ;;  %v437_v61 = vsel %vm434_vm5, %v432_v3, %v853_v4  ;;  %v504_v33 = vsel %vm68_vm0, %v492_v26, %v494_v55 }
 0x161   :  { %v518_v11 = vadd.f32 %v494_v55, %v474_v8  ;;  %v456_v14 = vmul.f32 %v448_v52, %v437_v61  ;;  %v496_v34 = vpop.permute.xlu0 %495 }
 0x162   :  { %v438_v49 = vsel %vm434_vm5, %v433_v9, %v860_v10 }
 0x163   :  { %v526_v15 = vmax.f32 %v518_v11, 0.0  ;;  %v490_v16 = vpop.permute.xlu1 %489  ;;  %v476_v18 = vadd.f32 %v468_v1, %v456_v14  ;;  %v458_v12 = vmul.f32 %v448_v52, %v438_v49 }
 0x164   :  { %v516_v17 = vadd.f32 %v490_v16, %v472_v13  ;;  %v503_v37 = vsel %vm68_vm0, %v881_v23, %v490_v16 }
 0x165   :  { %534 = vst.msk [vmem:[%s976_s6 + $0x18] sm:$0xff] %vm68_vm0, %v526_v15  ;;  %v478_v21 = vadd.f32 %v468_v1, %v458_v12  ;;  %v500_v43 = vpop.permute.xlu0 %499 }
 0x166   :  { %v524_v7 = vmax.f32 %v516_v17, 0.0 }
 0x167   :  { %v498_v19 = vpop.permute.xlu1 %497 }
 0x168   :  { %532 = vst.msk [vmem:[%s976_s6 + $0x8] sm:$0xff] %vm68_vm0, %v524_v7  ;;  %v520_v4 = vadd.f32 %v498_v19, %v476_v18  ;;  %v505_v50 = vsel %vm68_vm0, %v496_v34, %v498_v19 }
 0x16a   :  { %v528_v20 = vmax.f32 %v520_v4, 0.0 }
 0x16b   :  { %v502_v22 = vpop.permute.xlu1 %501 }
 0x16c   :  { %536 = vst.msk [vmem:[%s976_s6 + $0x28] sm:$0xff] %vm68_vm0, %v528_v20  ;;  %v522_v10 = vadd.f32 %v502_v22, %v478_v21  ;;  %v506_v46 = vsel %vm68_vm0, %v500_v43, %v502_v22 }
 0x16e   :  { %v530_v24 = vmax.f32 %v522_v10, 0.0 }
 0x170   :  { %538 = vst.msk [vmem:[%s976_s6 + $0x38] sm:$0xff] %vm68_vm0, %v530_v24 }
 0x19b   :  { %v639_v28 = vpop.f32.mrf.mxu0 }
 0x19c   :  { %v453_v29 = vmul.f32 %v639_v28, %v444_v25 }
 0x19d   :  { %v345_v30 = vpop.f32.mrf.mxu0 }
 0x19e   :  { %v473_v31 = vadd.f32 %v464_v27, %v453_v29  ;;  %v451_v32 = vmul.f32 %v444_v25, %v345_v30 }
 0x1a0   :  { %v517_v35 = vadd.f32 %v504_v33, %v473_v31  ;;  %v471_v36 = vadd.f32 %v464_v27, %v451_v32 }
 0x1a2   :  { %v525_v38 = vmax.f32 %v517_v35, 0.0  ;;  %v515_v39 = vadd.f32 %v503_v37, %v471_v36 }
 0x1a3   :  { %v642_v40 = vpop.f32.mrf.mxu0 }
 0x1a4   :  { %533 = vst [vmem:[%s976_s6 + $0x10] sm:$0xff] %v525_v38  ;;  %v523_v47 = vmax.f32 %v515_v39, 0.0  ;;  %v457_v41 = vmul.f32 %v642_v40, %v444_v25 }
 0x1a5   :  { %v355_v42 = vpop.f32.mrf.mxu0 }
 0x1a6   :  { %531 = vst [vmem:[%s976_s6] sm:$0xff] %v523_v47  ;;  %v477_v44 = vadd.f32 %v464_v27, %v457_v41  ;;  %v455_v45 = vmul.f32 %v444_v25, %v355_v42 }
 0x1a8   :  { %v521_v23 = vadd.f32 %v506_v46, %v477_v44  ;;  %v475_v48 = vadd.f32 %v464_v27, %v455_v45 }
 0x1aa   :  { %v529_v51 = vmax.f32 %v521_v23, 0.0  ;;  %v519_v52 = vadd.f32 %v505_v50, %v475_v48 }
 0x1ac   :  { %537 = vst [vmem:[%s976_s6 + $0x30] sm:$0xff] %v529_v51  ;;  %v527_v53 = vmax.f32 %v519_v52, 0.0 }
 0x1ae   :  { %535 = vst [vmem:[%s976_s6 + $0x20] sm:$0xff] %v527_v53 }

</bundles_post_ra>
